<compile_context>
chip_gen: v7x
topology: tpu7x:2x2x1
jax: 0.10.0
libtpu: 0.0.40
codegen_flags: <defaults>
</compile_context>

<pallas_src>
import functools
import numpy as np
import jax
import jax.numpy as jnp
from jax.experimental import pallas as pl
from jax.experimental.pallas import tpu as pltpu

# ---------------- Kaldi fbank constants (match the module defaults) ----------
SAMPLE_RATE = 16000
FRAME_LENGTH_MS = 25
FRAME_SHIFT_MS = 10
NUM_MEL_BINS = 64
PREEMPH = 0.97
LOW_FREQ = 20.0
HIGH_FREQ = 0.5 * SAMPLE_RATE                                 # high_freq=0 -> nyquist
WINDOW_SIZE = int(SAMPLE_RATE * FRAME_LENGTH_MS / 1000)       # 400
WINDOW_SHIFT = int(SAMPLE_RATE * FRAME_SHIFT_MS / 1000)       # 160
TAIL = WINDOW_SIZE - 2 * WINDOW_SHIFT                         # 80
PADDED_WINDOW = 512                                           # next power of two
NFFT = PADDED_WINDOW // 2                                     # 256 (Nyquist dropped; mel weight there is 0)
OUT_PAD = 128                                                 # lane-dense output width
EPS = float(np.finfo(np.float32).eps)                         # kaldi epsilon


def _round_up(x, k):
    return ((x + k - 1) // k) * k


def _cdiv(a, b):
    return (a + b - 1) // b


# ---------------- deterministic "parameters" (constant matrices) -------------
def _povey_window_f64():
    n = np.arange(WINDOW_SIZE, dtype=np.float64)
    hann = 0.5 - 0.5 * np.cos(2.0 * np.pi * n / (WINDOW_SIZE - 1))
    return hann ** 0.85


def _mel_banks_f64():
    # torchaudio.compliance.kaldi.get_mel_banks (vtln_warp=1.0); shape (64, 256)
    def mel_scale(f):
        return 1127.0 * np.log(1.0 + f / 700.0)

    mel_low = mel_scale(LOW_FREQ)
    mel_high = mel_scale(HIGH_FREQ)
    mel_delta = (mel_high - mel_low) / (NUM_MEL_BINS + 1)
    b = np.arange(NUM_MEL_BINS, dtype=np.float64)[:, None]
    left = mel_low + b * mel_delta
    center = mel_low + (b + 1.0) * mel_delta
    right = mel_low + (b + 2.0) * mel_delta
    fft_bin_width = SAMPLE_RATE / PADDED_WINDOW
    mel = mel_scale(fft_bin_width * np.arange(NFFT, dtype=np.float64))[None, :]
    up = (mel - left) / (center - left)
    down = (right - mel) / (right - center)
    return np.maximum(0.0, np.minimum(up, down))              # (64, 256)


@functools.lru_cache(maxsize=1)
def _combined_dft_matrix():
    """(400, 512) f32: DC-removal + pre-emphasis + Povey window folded into the
    real-DFT (cos | sin) matrix of the zero-padded (512) frame, Nyquist dropped."""
    n = WINDOW_SIZE
    # Per-frame linear preprocessing in column-vector form: z = W @ P @ D @ x
    D = np.eye(n) - np.ones((n, n)) / n                        # remove DC offset
    S = np.zeros((n, n))
    S[0, 0] = 1.0                                              # replicate-pad x[-1] := x[0]
    S[np.arange(1, n), np.arange(0, n - 1)] = 1.0
    P = np.eye(n) - PREEMPH * S                                # pre-emphasis
    W = np.diag(_povey_window_f64())                           # povey window
    pre_t = (W @ P @ D).T                                      # row-vector form (400, 400)

    # Real DFT over the 400 nonzero samples (zero-pad to 512 implicit);
    # exact integer modular phase for accuracy.
    nn = np.arange(n)[:, None]
    kk = np.arange(NFFT)[None, :]
    ang = 2.0 * np.pi * ((nn * kk) % PADDED_WINDOW).astype(np.float64) / PADDED_WINDOW
    dft = np.concatenate([np.cos(ang), np.sin(ang)], axis=1)   # (400, 512)
    return (pre_t @ dft).astype(np.float32)                    # (400, 512)


@functools.lru_cache(maxsize=1)
def _mel_matrix():
    """(256, 128) f32: kaldi mel filterbank, zero-padded to 128 output lanes."""
    fb = np.zeros((NFFT, OUT_PAD), dtype=np.float32)
    fb[:, :NUM_MEL_BINS] = _mel_banks_f64().T.astype(np.float32)
    return fb


# ---------------- Pallas kernel ----------------------------------------------
def fbank_kernel(frames_ref, dft_ref, mel_ref, out_ref):
    x = frames_ref[...]                                        # (TM, 400) raw frames
    # one wide MXU matmul: preprocessing + real DFT (cos | sin) in one shot
    spec = jnp.dot(x, dft_ref[...],
                   preferred_element_type=jnp.float32)         # (TM, 512)
    sq = spec * spec
    power = sq[:, :NFFT] + sq[:, NFFT:]                        # (TM, 256) |X(k)|^2
    mel = jnp.dot(power, mel_ref[...],
                  preferred_element_type=jnp.float32)          # (TM, 128) lane-dense
    out_ref[...] = jnp.log(jnp.maximum(mel, EPS))


def _choose_tiling(m):
    """Return (tm, m_pad).

    Tiles are made as big as possible (up to 1024 frames) to amortize the
    ~0.35 us per-grid-step pipeline overhead and fill full MXU M passes.
    For m <= 256 a single grid step is used; otherwise the number of steps is
    forced to be even (>= 2) so v7x's two TensorCores stay load-balanced when
    the grid axis is sharded via dimension_semantics=("parallel",).
    VMEM at TM=1024 is ~8-10 MiB with double buffering -> well under limits.
    """
    m8 = _round_up(m, 8)
    if m8 <= 256:                                   # tiny input: one grid step
        return m8, m8
    steps = max(2, _cdiv(m8, 1024))
    steps = _round_up(steps, 2)                     # even step count
    tm = _round_up(_cdiv(m8, steps), 8)
    return tm, tm * steps


def kaldi_fbank(pcm):
    """pcm: (1, num_samples) float32  ->  (num_frames, 64) float32."""
    wav = pcm[0].astype(jnp.float32)
    n = wav.shape[0]
    if n < WINDOW_SIZE:
        raise ValueError(
            f"audio too short: need >= {WINDOW_SIZE} samples, got {n}")
    m = 1 + (n - WINDOW_SIZE) // WINDOW_SHIFT                  # snip_edges=True
    tm, m_pad = _choose_tiling(m)

    # Slice/reshape framing (no gather, no index tensor): frame i is
    # [ b[i] | b[i+1] | b[i+2][:80] ] where b = pcm reshaped into 160-sample rows.
    total = (m_pad + 2) * WINDOW_SHIFT
    if total >= n:
        wav_p = jnp.pad(wav, (0, total - n))
    else:
        wav_p = wav[:total]                # only samples < (m+1)*160+80 <= n are read
    b = wav_p.reshape(m_pad + 2, WINDOW_SHIFT)
    frames = jnp.concatenate(
        [b[0:m_pad], b[1:m_pad + 1], b[2:m_pad + 2, :TAIL]], axis=1)  # (m_pad, 400)

    dftm = jnp.asarray(_combined_dft_matrix())                 # (400, 512)
    melm = jnp.asarray(_mel_matrix())                          # (256, 128)

    flops = 2 * m_pad * (WINDOW_SIZE * 2 * NFFT + NFFT * OUT_PAD)
    bytes_accessed = 4 * (m_pad * WINDOW_SIZE + WINDOW_SIZE * 2 * NFFT
                          + NFFT * OUT_PAD + m_pad * OUT_PAD)

    out = pl.pallas_call(
        fbank_kernel,
        out_shape=jax.ShapeDtypeStruct((m_pad, OUT_PAD), jnp.float32),
        grid_spec=pltpu.PrefetchScalarGridSpec(
            num_scalar_prefetch=0,
            grid=(m_pad // tm,),
            in_specs=[
                # streamed per tile
                pl.BlockSpec((tm, WINDOW_SIZE), lambda i: (i, 0)),
                # constants: block index never changes -> fetched once
                pl.BlockSpec((WINDOW_SIZE, 2 * NFFT), lambda i: (0, 0)),
                pl.BlockSpec((NFFT, OUT_PAD), lambda i: (0, 0)),
            ],
            out_specs=pl.BlockSpec((tm, OUT_PAD), lambda i: (i, 0)),
        ),
        compiler_params=pltpu.CompilerParams(
            dimension_semantics=("parallel",)),
        cost_estimate=pl.CostEstimate(
            flops=flops,
            transcendentals=m_pad * OUT_PAD,
            bytes_accessed=bytes_accessed),
    )(frames, dftm, melm)
    # Module contract is (num_frames, 64); consumers that can work with the
    # lane-dense (m_pad, 128) slab directly should skip this slice.
    return out[:m, :NUM_MEL_BINS]


# ---------------- pure-numpy reference (same math, fp64, via rfft) -----------
def ref_fbank_np(pcm):
    wav = np.asarray(pcm[0], dtype=np.float64)
    n = wav.shape[0]
    m = 1 + (n - WINDOW_SIZE) // WINDOW_SHIFT
    idx = (np.arange(m)[:, None] * WINDOW_SHIFT
           + np.arange(WINDOW_SIZE)[None, :])
    frames = wav[idx]
    frames = frames - frames.mean(axis=1, keepdims=True)
    prev = np.concatenate([frames[:, :1], frames[:, :-1]], axis=1)
    frames = frames - PREEMPH * prev
    frames = frames * _povey_window_f64()
    padded = np.zeros((m, PADDED_WINDOW))
    padded[:, :WINDOW_SIZE] = frames
    spec = np.abs(np.fft.rfft(padded, axis=1)) ** 2            # (m, 257)
    mel = spec[:, :NFFT] @ _mel_banks_f64().T                  # Nyquist weight is 0
    return np.log(np.maximum(mel, EPS))


if __name__ == "__main__":
    key = jax.random.PRNGKey(0)
    num_samples = WINDOW_SIZE + WINDOW_SHIFT * 15              # -> 16 frames
    pcm = jax.random.uniform(key, (1, num_samples), jnp.float32,
                             minval=-1.0, maxval=1.0)          # normalized PCM

    feats = kaldi_fbank(pcm)
    feats = jax.block_until_ready(feats)

    ref = ref_fbank_np(np.asarray(pcm))
    np.testing.assert_allclose(np.asarray(feats), ref, rtol=5e-3, atol=5e-3)
    assert feats.shape == (16, NUM_MEL_BINS)
    print("KERNEL_OK")
</pallas_src>

<mosaic_0001>
module attributes {stable_mosaic.version = 11 : i64} {
  func.func @fbank_kernel(%arg0: i32, %arg1: memref<16x400xf32, #tpu.memory_space<vmem>>, %arg2: memref<400x512xf32, #tpu.memory_space<vmem>>, %arg3: memref<256x128xf32, #tpu.memory_space<vmem>>, %arg4: memref<16x128xf32, #tpu.memory_space<vmem>>) attributes {dimension_semantics = [#tpu.dimension_semantics<parallel>], iteration_bounds = array<i64: 1>, scalar_prefetch = 0 : i64, scratch_operands = 0 : i64, tpu.core_type = #tpu.core_type<tc>, window_params = [{transform_indices = @transform_0, window_bounds = array<i64: 16, 400>}, {pipeline_mode = #tpu.pipeline_mode<synchronous>, transform_indices = @transform_1, window_bounds = array<i64: 400, 512>}, {pipeline_mode = #tpu.pipeline_mode<synchronous>, transform_indices = @transform_2, window_bounds = array<i64: 256, 128>}, {transform_indices = @transform_3, window_bounds = array<i64: 16, 128>}]} {
    %c0 = arith.constant 0 : index
    %c0_0 = arith.constant 0 : index
    %0 = vector.load %arg1[%c0, %c0_0] : memref<16x400xf32, #tpu.memory_space<vmem>>, vector<16x400xf32>
    %c0_1 = arith.constant 0 : index
    %c0_2 = arith.constant 0 : index
    %1 = vector.load %arg2[%c0_1, %c0_2] : memref<400x512xf32, #tpu.memory_space<vmem>>, vector<400x512xf32>
    %cst = arith.constant dense<0.000000e+00> : vector<16x512xf32>
    %2 = tpu.matmul %0, %1, %cst {dimension_numbers = #tpu.dot_dimension_numbers<[1], [0], [0], [1], [0, 0, 1, 1], [], []>} : vector<16x400xf32>, vector<400x512xf32>, vector<16x512xf32> -> vector<16x512xf32>
    %3 = arith.mulf %2, %2 : vector<16x512xf32>
    %4 = vector.extract_strided_slice %3 {offsets = [0, 0], sizes = [16, 256], strides = [1, 1]} : vector<16x512xf32> to vector<16x256xf32>
    %5 = vector.extract_strided_slice %3 {offsets = [0, 256], sizes = [16, 256], strides = [1, 1]} : vector<16x512xf32> to vector<16x256xf32>
    %6 = arith.addf %4, %5 : vector<16x256xf32>
    %c0_3 = arith.constant 0 : index
    %c0_4 = arith.constant 0 : index
    %7 = vector.load %arg3[%c0_3, %c0_4] : memref<256x128xf32, #tpu.memory_space<vmem>>, vector<256x128xf32>
    %cst_5 = arith.constant dense<0.000000e+00> : vector<16x128xf32>
    %8 = tpu.matmul %6, %7, %cst_5 {dimension_numbers = #tpu.dot_dimension_numbers<[1], [0], [0], [1], [0, 0, 1, 1], [], []>} : vector<16x256xf32>, vector<256x128xf32>, vector<16x128xf32> -> vector<16x128xf32>
    %cst_6 = arith.constant 1.1920929E-7 : f32
    %9 = vector.broadcast %cst_6 : f32 to vector<16x128xf32>
    %10 = arith.maximumf %8, %9 : vector<16x128xf32>
    %11 = math.log %10 : vector<16x128xf32>
    %c0_7 = arith.constant 0 : index
    %c0_8 = arith.constant 0 : index
    %12 = vector.load %arg4[%c0_7, %c0_8] : memref<16x128xf32, #tpu.memory_space<vmem>>, vector<16x128xf32>
    tpu.vector_store %arg4[%c0_7, %c0_8], %11 {strides = array<i32>} : memref<16x128xf32, #tpu.memory_space<vmem>>, vector<16x128xf32>,
    return
  }
  func.func @transform_0(%arg0: i32) -> (i32, i32) {
    %c0_i32 = arith.constant 0 : i32
    %c0_i32_0 = arith.constant 0 : i32
    return %arg0, %c0_i32 : i32, i32
  }
  func.func @transform_1(%arg0: i32) -> (i32, i32) {
    %c0_i32 = arith.constant 0 : i32
    %c0_i32_0 = arith.constant 0 : i32
    %c0_i32_1 = arith.constant 0 : i32
    return %c0_i32, %c0_i32_0 : i32, i32
  }
  func.func @transform_2(%arg0: i32) -> (i32, i32) {
    %c0_i32 = arith.constant 0 : i32
    %c0_i32_0 = arith.constant 0 : i32
    %c0_i32_1 = arith.constant 0 : i32
    return %c0_i32, %c0_i32_0 : i32, i32
  }
  func.func @transform_3(%arg0: i32) -> (i32, i32) {
    %c0_i32 = arith.constant 0 : i32
    %c0_i32_0 = arith.constant 0 : i32
    return %arg0, %c0_i32 : i32, i32
  }
}

</mosaic_0001>

<bundles_post_ra>
// kernel: tpu_custom_call.1
= control target key start
LH: loop header
LB: loop body
LE: loop exit
PB: predicated region body
PF: predicated region fallthrough
CT: control target
= control target key end

     0   :  { %8 = vsyncpa [#allocation3], 0  ;;  %s1221_s0 = inlined_call_operand.hbm [shape: f32[16,400], index: 0, kind: input, shape index: {}]   ;;  %s1222_s1 = inlined_call_operand.hbm [shape: f32[400,512], index: 1, kind: input, shape index: {}]   ;;  %s1223_s2 = inlined_call_operand.hbm [shape: f32[256,128], index: 2, kind: input, shape index: {}]   ;;  %s1224_s3 = inlined_call_operand.hbm [shape: f32[16,128], index: 3, kind: output, shape index: {}]  }
   0x1   :  { %9 = vsyncpa [#allocation6], 0 }
   0x2   :  { %10 = vsyncpa [#allocation4], 0  ;;  %s1128_s12 = smov [#allocation5]   ;;  %s1129_s14 = smov [#allocation2]  }
   0x3   :  { %s28_s13 = sshll.u32 %s1128_s12, 4  ;;  %s16_s15 = sshll.u32 %s1129_s14, 4  ;;  %s29_s13 = int_to_ptr.vmem [resolvable:$true] %s28_s13  ;;  %s1156_s15 = int_to_ptr.vmem [resolvable:$true] %s16_s15 }
   0x4   :  { %s1034_s18 = scalar_lea.hbm %s1222_s1, 25600 }
   0x5   :  { %p1035_p0 = scmp.ne.s32.totalorder %s1222_s1, %s1034_s18  ;;  %p1038_p1 = scmp.lt.u32.totalorder %s1034_s18, %s1222_s1 }
   0x7   :  { %p1040_p2 = pnand %p1038_p1, %p1035_p0 }
   0x9   :  { %1043 = shalt.err (!%p1040_p2)
}
   0xa   :  { %s1044_s23 = scalar_lea.vmem %s29_s13, 25600  ;;  %p1049_p4 = scmp.lt.s32.totalorder %s29_s13, %s29_s13 }
   0xb   :  { %p1045_p3 = scmp.ne.s32.totalorder %s29_s13, %s1044_s23  ;;  %p1050_p5 = scmp.lt.s32.totalorder %s1044_s23, %s1044_s23 }
   0xd   :  { %p1051_p6 = por %p1050_p5, %p1049_p4 }
   0xf   :  { %p1052_p7 = pnand %p1051_p6, %p1045_p3 }
  0x11   :  { %1055 = shalt.err (!%p1052_p7)
}
  0x12   :  { %s1130_s24 = smov 512   ;;  %s1131_s25 = smov 32  }
  0x13   :  { %34 = dma.hbm_to_vmem [thread:$0]  %s1222_s1, 25600, %s29_s13, [#allocation6], %s1130_s24, %s1130_s24, %s1131_s25  }
  0x14   :  { %s1056_s30 = scalar_lea.hbm %s1221_s0, 1024 }
  0x15   :  { %p1057_p8 = scmp.ne.s32.totalorder %s1221_s0, %s1056_s30  ;;  %p1060_p9 = scmp.lt.u32.totalorder %s1056_s30, %s1221_s0 }
  0x17   :  { %p1062_p10 = pnand %p1060_p9, %p1057_p8 }
  0x19   :  { %1065 = shalt.err (!%p1062_p10)
}
  0x1a   :  { %s1066_s8 = scalar_lea.vmem %s1156_s15, 1024  ;;  %p1071_p12 = scmp.lt.s32.totalorder %s1156_s15, %s1156_s15 }
  0x1b   :  { %p1067_p11 = scmp.ne.s32.totalorder %s1156_s15, %s1066_s8  ;;  %p1072_p13 = scmp.lt.s32.totalorder %s1066_s8, %s1066_s8 }
  0x1d   :  { %p1073_p0 = por %p1072_p13, %p1071_p12 }
  0x1f   :  { %p1074_p1 = pnand %p1073_p0, %p1067_p11 }
  0x21   :  { %1077 = shalt.err (!%p1074_p1)
}
  0x22   :  { %22 = dma.hbm_to_vmem [thread:$0]  %s1221_s0, 1024, %s1156_s15, [#allocation3], %s1130_s24, %s1130_s24, %s1131_s25  }
  0x23   :  { %s1132_s10 = smov [#allocation7]   ;;  %s1078_s14 = scalar_lea.hbm %s1223_s2, 4096 }
  0x24   :  { %s40_s11 = sshll.u32 %s1132_s10, 4  ;;  %p1079_p2 = scmp.ne.s32.totalorder %s1223_s2, %s1078_s14  ;;  %s41_s11 = int_to_ptr.vmem [resolvable:$true] %s40_s11 }
  0x25   :  { %p1082_p3 = scmp.lt.u32.totalorder %s1078_s14, %s1223_s2 }
  0x27   :  { %p1084_p4 = pnand %p1082_p3, %p1079_p2 }
  0x29   :  { %1087 = shalt.err (!%p1084_p4)
}
  0x2a   :  { %s1088_s20 = scalar_lea.vmem %s41_s11, 4096  ;;  %p1093_p6 = scmp.lt.s32.totalorder %s41_s11, %s41_s11 }
  0x2b   :  { %p1089_p5 = scmp.ne.s32.totalorder %s41_s11, %s1088_s20  ;;  %p1094_p7 = scmp.lt.s32.totalorder %s1088_s20, %s1088_s20 }
  0x2d   :  { %p1095_p8 = por %p1094_p7, %p1093_p6 }
  0x2f   :  { %p1096_p9 = pnand %p1095_p8, %p1089_p5 }
  0x31   :  { %1099 = shalt.err (!%p1096_p9)
}
  0x32   :  { %s1133_s0 = smov 128   ;;  %s1134_s15 = smov 8  }
  0x33   :  { %46 = dma.hbm_to_vmem [thread:$0]  %s1223_s2, 4096, %s41_s11, [#allocation6], %s1133_s0, %s1133_s0, %s1134_s15  }
  0x34   :  { %1122 = dma.done.wait [#allocation3], 1024  }
  0x35   :  { %1123 = vsyncadd [#allocation3], 4294966272 }
  0x36   :  { %1124 = dma.done.wait [#allocation6], 29696  }
  0x37   :  { %1125 = vsyncadd [#allocation6], 4294937600  ;;  %v65_v0 = vld [vmem:[#allocation5 + $0x8] sm:$0xff]  ;;  %v67_v2 = vld [vmem:[#allocation5 + $0x18] sm:$0xff]  ;;  %vm264_vm0 = vcmask 130048   ;;  %s1135_s2 = smov [#allocation8]  }
  0x38   :  { %v69_v1 = vld [vmem:[#allocation5 + $0x28] sm:$0xff]  ;;  %v71_v4 = vld [vmem:[#allocation5 + $0x38] sm:$0xff]  ;;  %v64_v5 = vld [vmem:[#allocation5] sm:$0xff]  ;;  %s711_s23 = sshll.u32 %s1135_s2, 4  ;;  %s712_s23 = int_to_ptr.vmem [resolvable:$true] %s711_s23 }
  0x39   :  { %v766_v3 = vpack.c.bf16 %v69_v1, %v65_v0  ;;  %v68_v6 = vld [vmem:[#allocation5 + $0x20] sm:$0xff]  ;;  %v866_v7 = vpack.c.bf16 %v71_v4, %v67_v2  ;;  %v66_v9 = vld [vmem:[#allocation5 + $0x10] sm:$0xff]  ;;  %v73_v11 = vld [vmem:[#allocation5 + $0x48] sm:$0xff]  ;;  %s1100_s24 = scalar_lea.vmem %s712_s23, 256  ;;  %p1105_p11 = scmp.lt.s32.totalorder %s712_s23, %s712_s23 }
  0x3a   :  { %v768_v8 = vpack.c.bf16 %v68_v6, %v64_v5  ;;  %v70_v10 = vld [vmem:[#allocation5 + $0x30] sm:$0xff]  ;;  %v77_v13 = vld [vmem:[#allocation5 + $0x68] sm:$0xff]  ;;  %v75_v14 = vld [vmem:[#allocation5 + $0x58] sm:$0xff]  ;;  %p1101_p10 = scmp.ne.s32.totalorder %s712_s23, %s1100_s24  ;;  %p1106_p12 = scmp.lt.s32.totalorder %s1100_s24, %s1100_s24 }
  0x3b   :  { %767 = vmatprep.subr.bf16.mxu0 %v766_v3  ;;  %v868_v12 = vpack.c.bf16 %v70_v10, %v66_v9  ;;  %v79_v15 = vld [vmem:[#allocation5 + $0x78] sm:$0xff]  ;;  %867 = vmatprep.subr.bf16.mxu1 %v866_v7  ;;  %v770_v16 = vpack.c.bf16 %v77_v13, %v73_v11  ;;  %v72_v18 = vld [vmem:[#allocation5 + $0x40] sm:$0xff]  ;;  %v74_v20 = vld [vmem:[#allocation5 + $0x50] sm:$0xff] }
  0x3c   :  { %769 = vmatpush1.bf16.msra.mxu0 %v768_v8  ;;  %v870_v17 = vpack.c.bf16 %v79_v15, %v75_v14  ;;  %v76_v19 = vld [vmem:[#allocation5 + $0x60] sm:$0xff]  ;;  %v78_v22 = vld [vmem:[#allocation5 + $0x70] sm:$0xff]  ;;  %v81_v23 = vld [vmem:[#allocation5 + $0x88] sm:$0xff]  ;;  %p1107_p13 = por %p1106_p12, %p1105_p11 }
  0x3d   :  { %869 = vmatpush1.bf16.msra.mxu1 %v868_v12  ;;  %v772_v21 = vpack.c.bf16 %v76_v19, %v72_v18  ;;  %v85_v24 = vld [vmem:[#allocation5 + $0xa8] sm:$0xff]  ;;  %771 = vmatprep.subr.bf16.mxu0 %v770_v16  ;;  %v872_v25 = vpack.c.bf16 %v78_v22, %v74_v20  ;;  %v83_v27 = vld [vmem:[#allocation5 + $0x98] sm:$0xff]  ;;  %v80_v29 = vld [vmem:[#allocation5 + $0x80] sm:$0xff] }
  0x3e   :  { %871 = vmatprep.subr.bf16.mxu1 %v870_v17  ;;  %v774_v26 = vpack.c.bf16 %v85_v24, %v81_v23  ;;  %v87_v28 = vld [vmem:[#allocation5 + $0xb8] sm:$0xff]  ;;  %v84_v31 = vld [vmem:[#allocation5 + $0xa0] sm:$0xff]  ;;  %v82_v32 = vld [vmem:[#allocation5 + $0x90] sm:$0xff]  ;;  %p1108_p0 = pnand %p1107_p13, %p1101_p10 }
  0x3f   :  { %v874_v30 = vpack.c.bf16 %v87_v28, %v83_v27  ;;  %v86_v33 = vld [vmem:[#allocation5 + $0xb0] sm:$0xff]  ;;  %v776_v34 = vpack.c.bf16 %v84_v31, %v80_v29  ;;  %v89_v35 = vld [vmem:[#allocation5 + $0xc8] sm:$0xff]  ;;  %v91_v37 = vld [vmem:[#allocation5 + $0xd8] sm:$0xff] }
  0x40   :  { %773 = vmatpush1.bf16.msra.mxu0 %v772_v21  ;;  %v93_v36 = vld [vmem:[#allocation5 + $0xe8] sm:$0xff]  ;;  %v876_v38 = vpack.c.bf16 %v86_v33, %v82_v32  ;;  %v95_v40 = vld [vmem:[#allocation5 + $0xf8] sm:$0xff]  ;;  %v88_v41 = vld [vmem:[#allocation5 + $0xc0] sm:$0xff] }
  0x41   :  { %873 = vmatpush1.bf16.msra.mxu1 %v872_v25  ;;  %775 = vmatprep.subr.bf16.mxu0 %v774_v26  ;;  %v778_v39 = vpack.c.bf16 %v93_v36, %v89_v35  ;;  %v92_v42 = vld [vmem:[#allocation5 + $0xe0] sm:$0xff]  ;;  %v878_v43 = vpack.c.bf16 %v95_v40, %v91_v37  ;;  %v90_v44 = vld [vmem:[#allocation5 + $0xd0] sm:$0xff]  ;;  %v97_v46 = vld [vmem:[#allocation5 + $0x108] sm:$0xff] }
  0x42   :  { %875 = vmatprep.subr.bf16.mxu1 %v874_v30  ;;  %v94_v45 = vld [vmem:[#allocation5 + $0xf0] sm:$0xff]  ;;  %v101_v47 = vld [vmem:[#allocation5 + $0x128] sm:$0xff]  ;;  %v99_v48 = vld [vmem:[#allocation5 + $0x118] sm:$0xff]  ;;  %v780_v50 = vpack.c.bf16 %v92_v42, %v88_v41 }
  0x43   :  { %v103_v49 = vld [vmem:[#allocation5 + $0x138] sm:$0xff]  ;;  %v880_v51 = vpack.c.bf16 %v94_v45, %v90_v44  ;;  %v782_v52 = vpack.c.bf16 %v101_v47, %v97_v46  ;;  %v96_v53 = vld [vmem:[#allocation5 + $0x100] sm:$0xff]  ;;  %v98_v55 = vld [vmem:[#allocation5 + $0x110] sm:$0xff] }
  0x44   :  { %777 = vmatpush1.bf16.msra.mxu0 %v776_v34  ;;  %v100_v54 = vld [vmem:[#allocation5 + $0x120] sm:$0xff]  ;;  %v882_v56 = vpack.c.bf16 %v103_v49, %v99_v48  ;;  %v102_v57 = vld [vmem:[#allocation5 + $0x130] sm:$0xff]  ;;  %v105_v58 = vld [vmem:[#allocation5 + $0x148] sm:$0xff] }
  0x45   :  { %877 = vmatpush1.bf16.msra.mxu1 %v876_v38  ;;  %779 = vmatprep.subr.bf16.mxu0 %v778_v39  ;;  %v109_v59 = vld [vmem:[#allocation5 + $0x168] sm:$0xff]  ;;  %v107_v60 = vld [vmem:[#allocation5 + $0x158] sm:$0xff]  ;;  %v784_v62 = vpack.c.bf16 %v100_v54, %v96_v53  ;;  %v884_v63 = vpack.c.bf16 %v102_v57, %v98_v55  ;;  %v104_v1 = vld [vmem:[#allocation5 + $0x140] sm:$0xff] }
  0x46   :  { %879 = vmatprep.subr.bf16.mxu1 %v878_v43  ;;  %v111_v61 = vld [vmem:[#allocation5 + $0x178] sm:$0xff]  ;;  %v786_v0 = vpack.c.bf16 %v109_v59, %v105_v58  ;;  %v108_v2 = vld [vmem:[#allocation5 + $0x160] sm:$0xff]  ;;  %v106_v3 = vld [vmem:[#allocation5 + $0x150] sm:$0xff] }
  0x47   :  { %v886_v4 = vpack.c.bf16 %v111_v61, %v107_v60  ;;  %v110_v5 = vld [vmem:[#allocation5 + $0x170] sm:$0xff]  ;;  %v113_v6 = vld [vmem:[#allocation5 + $0x188] sm:$0xff]  ;;  %v115_v8 = vld [vmem:[#allocation5 + $0x198] sm:$0xff]  ;;  %v788_v10 = vpack.c.bf16 %v108_v2, %v104_v1 }
  0x48   :  { %781 = vmatpush1.bf16.msra.mxu0 %v780_v50  ;;  %v117_v7 = vld [vmem:[#allocation5 + $0x1a8] sm:$0xff]  ;;  %v119_v9 = vld [vmem:[#allocation5 + $0x1b8] sm:$0xff]  ;;  %v888_v11 = vpack.c.bf16 %v110_v5, %v106_v3  ;;  %v112_v13 = vld [vmem:[#allocation5 + $0x180] sm:$0xff] }
  0x49   :  { %881 = vmatpush1.bf16.msra.mxu1 %v880_v51  ;;  %783 = vmatprep.subr.bf16.mxu0 %v782_v52  ;;  %v790_v12 = vpack.c.bf16 %v117_v7, %v113_v6  ;;  %v116_v14 = vld [vmem:[#allocation5 + $0x1a0] sm:$0xff]  ;;  %v114_v15 = vld [vmem:[#allocation5 + $0x190] sm:$0xff]  ;;  %v890_v16 = vpack.c.bf16 %v119_v9, %v115_v8  ;;  %v121_v18 = vld [vmem:[#allocation5 + $0x1c8] sm:$0xff] }
  0x4a   :  { %883 = vmatprep.subr.bf16.mxu1 %v882_v56  ;;  %v118_v17 = vld [vmem:[#allocation5 + $0x1b0] sm:$0xff]  ;;  %v125_v19 = vld [vmem:[#allocation5 + $0x1e8] sm:$0xff]  ;;  %v123_v20 = vld [vmem:[#allocation5 + $0x1d8] sm:$0xff]  ;;  %v792_v22 = vpack.c.bf16 %v116_v14, %v112_v13 }
  0x4b   :  { %v127_v21 = vld [vmem:[#allocation5 + $0x1f8] sm:$0xff]  ;;  %v892_v23 = vpack.c.bf16 %v118_v17, %v114_v15  ;;  %v794_v24 = vpack.c.bf16 %v125_v19, %v121_v18  ;;  %v120_v25 = vld [vmem:[#allocation5 + $0x1c0] sm:$0xff]  ;;  %v122_v27 = vld [vmem:[#allocation5 + $0x1d0] sm:$0xff] }
  0x4c   :  { %785 = vmatpush1.bf16.msra.mxu0 %v784_v62  ;;  %v124_v26 = vld [vmem:[#allocation5 + $0x1e0] sm:$0xff]  ;;  %v894_v28 = vpack.c.bf16 %v127_v21, %v123_v20  ;;  %v126_v29 = vld [vmem:[#allocation5 + $0x1f0] sm:$0xff]  ;;  %v129_v30 = vld [vmem:[#allocation5 + $0x208] sm:$0xff] }
  0x4d   :  { %885 = vmatpush1.bf16.msra.mxu1 %v884_v63  ;;  %787 = vmatprep.subr.bf16.mxu0 %v786_v0  ;;  %v133_v31 = vld [vmem:[#allocation5 + $0x228] sm:$0xff]  ;;  %v131_v32 = vld [vmem:[#allocation5 + $0x218] sm:$0xff]  ;;  %v796_v34 = vpack.c.bf16 %v124_v26, %v120_v25  ;;  %v896_v35 = vpack.c.bf16 %v126_v29, %v122_v27  ;;  %v128_v37 = vld [vmem:[#allocation5 + $0x200] sm:$0xff] }
  0x4e   :  { %887 = vmatprep.subr.bf16.mxu1 %v886_v4  ;;  %v135_v33 = vld [vmem:[#allocation5 + $0x238] sm:$0xff]  ;;  %v798_v36 = vpack.c.bf16 %v133_v31, %v129_v30  ;;  %v132_v38 = vld [vmem:[#allocation5 + $0x220] sm:$0xff]  ;;  %v130_v39 = vld [vmem:[#allocation5 + $0x210] sm:$0xff] }
  0x4f   :  { %v898_v40 = vpack.c.bf16 %v135_v33, %v131_v32  ;;  %v134_v41 = vld [vmem:[#allocation5 + $0x230] sm:$0xff]  ;;  %v137_v42 = vld [vmem:[#allocation5 + $0x248] sm:$0xff]  ;;  %v139_v44 = vld [vmem:[#allocation5 + $0x258] sm:$0xff]  ;;  %v800_v46 = vpack.c.bf16 %v132_v38, %v128_v37 }
  0x50   :  { %789 = vmatpush1.bf16.msra.mxu0 %v788_v10  ;;  %v141_v43 = vld [vmem:[#allocation5 + $0x268] sm:$0xff]  ;;  %v143_v45 = vld [vmem:[#allocation5 + $0x278] sm:$0xff]  ;;  %v900_v47 = vpack.c.bf16 %v134_v41, %v130_v39  ;;  %v136_v49 = vld [vmem:[#allocation5 + $0x240] sm:$0xff] }
  0x51   :  { %889 = vmatpush1.bf16.msra.mxu1 %v888_v11  ;;  %791 = vmatprep.subr.bf16.mxu0 %v790_v12  ;;  %v802_v48 = vpack.c.bf16 %v141_v43, %v137_v42  ;;  %v140_v50 = vld [vmem:[#allocation5 + $0x260] sm:$0xff]  ;;  %v138_v51 = vld [vmem:[#allocation5 + $0x250] sm:$0xff]  ;;  %v902_v52 = vpack.c.bf16 %v143_v45, %v139_v44  ;;  %v145_v54 = vld [vmem:[#allocation5 + $0x288] sm:$0xff] }
  0x52   :  { %891 = vmatprep.subr.bf16.mxu1 %v890_v16  ;;  %v142_v53 = vld [vmem:[#allocation5 + $0x270] sm:$0xff]  ;;  %v149_v55 = vld [vmem:[#allocation5 + $0x2a8] sm:$0xff]  ;;  %v147_v56 = vld [vmem:[#allocation5 + $0x298] sm:$0xff]  ;;  %v804_v58 = vpack.c.bf16 %v140_v50, %v136_v49 }
  0x53   :  { %v151_v57 = vld [vmem:[#allocation5 + $0x2b8] sm:$0xff]  ;;  %v904_v59 = vpack.c.bf16 %v142_v53, %v138_v51  ;;  %v806_v60 = vpack.c.bf16 %v149_v55, %v145_v54  ;;  %v144_v61 = vld [vmem:[#allocation5 + $0x280] sm:$0xff]  ;;  %v146_v63 = vld [vmem:[#allocation5 + $0x290] sm:$0xff] }
  0x54   :  { %793 = vmatpush1.bf16.msra.mxu0 %v792_v22  ;;  %v148_v62 = vld [vmem:[#allocation5 + $0x2a0] sm:$0xff]  ;;  %v906_v0 = vpack.c.bf16 %v151_v57, %v147_v56  ;;  %v150_v1 = vld [vmem:[#allocation5 + $0x2b0] sm:$0xff]  ;;  %v153_v2 = vld [vmem:[#allocation5 + $0x2c8] sm:$0xff] }
  0x55   :  { %893 = vmatpush1.bf16.msra.mxu1 %v892_v23  ;;  %795 = vmatprep.subr.bf16.mxu0 %v794_v24  ;;  %v157_v3 = vld [vmem:[#allocation5 + $0x2e8] sm:$0xff]  ;;  %v155_v4 = vld [vmem:[#allocation5 + $0x2d8] sm:$0xff]  ;;  %v808_v6 = vpack.c.bf16 %v148_v62, %v144_v61  ;;  %v152_v7 = vld [vmem:[#allocation5 + $0x2c0] sm:$0xff]  ;;  %v908_v8 = vpack.c.bf16 %v150_v1, %v146_v63 }
  0x56   :  { %895 = vmatprep.subr.bf16.mxu1 %v894_v28  ;;  %v159_v5 = vld [vmem:[#allocation5 + $0x2f8] sm:$0xff]  ;;  %v810_v9 = vpack.c.bf16 %v157_v3, %v153_v2  ;;  %v156_v10 = vld [vmem:[#allocation5 + $0x2e0] sm:$0xff]  ;;  %v154_v11 = vld [vmem:[#allocation5 + $0x2d0] sm:$0xff] }
  0x57   :  { %v158_v12 = vld [vmem:[#allocation5 + $0x2f0] sm:$0xff]  ;;  %v910_v13 = vpack.c.bf16 %v159_v5, %v155_v4  ;;  %v161_v14 = vld [vmem:[#allocation5 + $0x308] sm:$0xff]  ;;  %v163_v17 = vld [vmem:[#allocation5 + $0x318] sm:$0xff]  ;;  %v812_v19 = vpack.c.bf16 %v156_v10, %v152_v7 }
  0x58   :  { %797 = vmatpush1.bf16.msra.mxu0 %v796_v34  ;;  %v165_v15 = vld [vmem:[#allocation5 + $0x328] sm:$0xff]  ;;  %v167_v18 = vld [vmem:[#allocation5 + $0x338] sm:$0xff]  ;;  %v912_v20 = vpack.c.bf16 %v158_v12, %v154_v11  ;;  %v160_v22 = vld [vmem:[#allocation5 + $0x300] sm:$0xff] }
  0x59   :  { %897 = vmatpush1.bf16.msra.mxu1 %v896_v35  ;;  %799 = vmatprep.subr.bf16.mxu0 %v798_v36  ;;  %v57_v16 = vld [vmem:[#allocation2 + $0x8] sm:$0xff]  ;;  %v814_v21 = vpack.c.bf16 %v165_v15, %v161_v14  ;;  %v164_v23 = vld [vmem:[#allocation5 + $0x320] sm:$0xff]  ;;  %v162_v24 = vld [vmem:[#allocation5 + $0x310] sm:$0xff]  ;;  %v914_v25 = vpack.c.bf16 %v167_v18, %v163_v17 }
  0x5a   :  { %899 = vmatprep.subr.bf16.mxu1 %v898_v40  ;;  %335 = vmatprep.mubr.f32.mxu0 %v57_v16  ;;  %v166_v26 = vld [vmem:[#allocation5 + $0x330] sm:$0xff]  ;;  %v169_v27 = vld [vmem:[#allocation5 + $0x348] sm:$0xff]  ;;  %v171_v29 = vld [vmem:[#allocation5 + $0x358] sm:$0xff]  ;;  %v816_v31 = vpack.c.bf16 %v164_v23, %v160_v22 }
  0x5b   :  { %489 = vmatprep.mubr.f32.mxu1 %v57_v16  ;;  %v173_v28 = vld [vmem:[#allocation5 + $0x368] sm:$0xff]  ;;  %v175_v30 = vld [vmem:[#allocation5 + $0x378] sm:$0xff]  ;;  %v916_v32 = vpack.c.bf16 %v166_v26, %v162_v24  ;;  %v168_v34 = vld [vmem:[#allocation5 + $0x340] sm:$0xff] }
  0x5c   :  { %801 = vmatpush1.bf16.msra.mxu0 %v800_v46  ;;  %v818_v33 = vpack.c.bf16 %v173_v28, %v169_v27  ;;  %v172_v35 = vld [vmem:[#allocation5 + $0x360] sm:$0xff]  ;;  %v170_v36 = vld [vmem:[#allocation5 + $0x350] sm:$0xff]  ;;  %v918_v37 = vpack.c.bf16 %v175_v30, %v171_v29  ;;  %v177_v39 = vld [vmem:[#allocation5 + $0x388] sm:$0xff] }
  0x5d   :  { %901 = vmatpush1.bf16.msra.mxu1 %v900_v47  ;;  %803 = vmatprep.subr.bf16.mxu0 %v802_v48  ;;  %v174_v38 = vld [vmem:[#allocation5 + $0x370] sm:$0xff]  ;;  %v181_v40 = vld [vmem:[#allocation5 + $0x3a8] sm:$0xff]  ;;  %v179_v41 = vld [vmem:[#allocation5 + $0x398] sm:$0xff]  ;;  %v820_v43 = vpack.c.bf16 %v172_v35, %v168_v34 }
  0x5e   :  { %903 = vmatprep.subr.bf16.mxu1 %v902_v52  ;;  %v183_v42 = vld [vmem:[#allocation5 + $0x3b8] sm:$0xff]  ;;  %v920_v44 = vpack.c.bf16 %v174_v38, %v170_v36  ;;  %v822_v45 = vpack.c.bf16 %v181_v40, %v177_v39  ;;  %v176_v46 = vld [vmem:[#allocation5 + $0x380] sm:$0xff]  ;;  %v178_v48 = vld [vmem:[#allocation5 + $0x390] sm:$0xff] }
  0x5f   :  { %v180_v47 = vld [vmem:[#allocation5 + $0x3a0] sm:$0xff]  ;;  %v922_v49 = vpack.c.bf16 %v183_v42, %v179_v41  ;;  %v182_v50 = vld [vmem:[#allocation5 + $0x3b0] sm:$0xff]  ;;  %v185_v51 = vld [vmem:[#allocation5 + $0x3c8] sm:$0xff] }
  0x60   :  { %805 = vmatpush1.bf16.msra.mxu0 %v804_v58  ;;  %v189_v52 = vld [vmem:[#allocation5 + $0x3e8] sm:$0xff]  ;;  %v187_v53 = vld [vmem:[#allocation5 + $0x3d8] sm:$0xff]  ;;  %v824_v55 = vpack.c.bf16 %v180_v47, %v176_v46  ;;  %v924_v56 = vpack.c.bf16 %v182_v50, %v178_v48  ;;  %v184_v58 = vld [vmem:[#allocation5 + $0x3c0] sm:$0xff] }
  0x61   :  { %905 = vmatpush1.bf16.msra.mxu1 %v904_v59  ;;  %807 = vmatprep.subr.bf16.mxu0 %v806_v60  ;;  %v191_v54 = vld [vmem:[#allocation5 + $0x3f8] sm:$0xff]  ;;  %v826_v57 = vpack.c.bf16 %v189_v52, %v185_v51  ;;  %v188_v59 = vld [vmem:[#allocation5 + $0x3e0] sm:$0xff]  ;;  %v186_v60 = vld [vmem:[#allocation5 + $0x3d0] sm:$0xff] }
  0x62   :  { %907 = vmatprep.subr.bf16.mxu1 %v906_v0  ;;  %v926_v61 = vpack.c.bf16 %v191_v54, %v187_v53  ;;  %v190_v62 = vld [vmem:[#allocation5 + $0x3f0] sm:$0xff]  ;;  %v193_v63 = vld [vmem:[#allocation5 + $0x408] sm:$0xff]  ;;  %v195_v1 = vld [vmem:[#allocation5 + $0x418] sm:$0xff]  ;;  %v828_v3 = vpack.c.bf16 %v188_v59, %v184_v58 }
  0x63   :  { %v197_v0 = vld [vmem:[#allocation5 + $0x428] sm:$0xff]  ;;  %v199_v2 = vld [vmem:[#allocation5 + $0x438] sm:$0xff]  ;;  %v928_v4 = vpack.c.bf16 %v190_v62, %v186_v60  ;;  %v196_v7 = vld [vmem:[#allocation5 + $0x420] sm:$0xff] }
  0x64   :  { %809 = vmatpush1.bf16.msra.mxu0 %v808_v6  ;;  %v830_v5 = vpack.c.bf16 %v197_v0, %v193_v63  ;;  %v192_v6 = vld [vmem:[#allocation5 + $0x400] sm:$0xff]  ;;  %v198_v10 = vld [vmem:[#allocation5 + $0x430] sm:$0xff]  ;;  %v201_v11 = vld [vmem:[#allocation5 + $0x448] sm:$0xff] }
  0x65   :  { %909 = vmatpush1.bf16.msra.mxu1 %v908_v8  ;;  %811 = vmatprep.subr.bf16.mxu0 %v810_v9  ;;  %v194_v8 = vld [vmem:[#allocation5 + $0x410] sm:$0xff]  ;;  %v930_v9 = vpack.c.bf16 %v199_v2, %v195_v1  ;;  %v205_v12 = vld [vmem:[#allocation5 + $0x468] sm:$0xff]  ;;  %v207_v14 = vld [vmem:[#allocation5 + $0x478] sm:$0xff]  ;;  %v832_v16 = vpack.c.bf16 %v196_v7, %v192_v6 }
  0x66   :  { %911 = vmatprep.subr.bf16.mxu1 %v910_v13  ;;  %v203_v13 = vld [vmem:[#allocation5 + $0x458] sm:$0xff]  ;;  %v56_v15 = vld [vmem:[#allocation2] sm:$0xff]  ;;  %v932_v17 = vpack.c.bf16 %v198_v10, %v194_v8  ;;  %v834_v18 = vpack.c.bf16 %v205_v12, %v201_v11  ;;  %v206_v23 = vld [vmem:[#allocation5 + $0x470] sm:$0xff] }
  0x67   :  { %v934_v22 = vpack.c.bf16 %v207_v14, %v203_v13  ;;  %v209_v24 = vld [vmem:[#allocation5 + $0x488] sm:$0xff]  ;;  %v211_v26 = vld [vmem:[#allocation5 + $0x498] sm:$0xff]  ;;  %v60_v30 = vld [vmem:[#allocation2 + $0x20] sm:$0xff] }
  0x68   :  { %813 = vmatpush1.bf16.msra.mxu0 %v812_v19  ;;  %v200_v19 = vld [vmem:[#allocation5 + $0x440] sm:$0xff]  ;;  %v215_v27 = vld [vmem:[#allocation5 + $0x4b8] sm:$0xff]  ;;  %v61_v28 = vld [vmem:[#allocation2 + $0x28] sm:$0xff] }
  0x69   :  { %913 = vmatpush1.bf16.msra.mxu1 %v912_v20  ;;  %815 = vmatprep.subr.bf16.mxu0 %v814_v21  ;;  %v204_v20 = vld [vmem:[#allocation5 + $0x460] sm:$0xff]  ;;  %v202_v21 = vld [vmem:[#allocation5 + $0x450] sm:$0xff]  ;;  %v938_v36 = vpack.c.bf16 %v215_v27, %v211_v26  ;;  %v217_v38 = vld [vmem:[#allocation5 + $0x4c8] sm:$0xff] }
  0x6a   :  { %915 = vmatprep.subr.bf16.mxu1 %v914_v25  ;;  %v213_v25 = vld [vmem:[#allocation5 + $0x4a8] sm:$0xff]  ;;  %v836_v29 = vpack.c.bf16 %v204_v20, %v200_v19  ;;  %v212_v34 = vld [vmem:[#allocation5 + $0x4a0] sm:$0xff]  ;;  %v210_v35 = vld [vmem:[#allocation5 + $0x490] sm:$0xff] }
  0x6b   :  { %v221_v39 = vld [vmem:[#allocation5 + $0x4e8] sm:$0xff]  ;;  %v219_v40 = vld [vmem:[#allocation5 + $0x4d8] sm:$0xff]  ;;  %v216_v46 = vld [vmem:[#allocation5 + $0x4c0] sm:$0xff] }
  0x6c   :  { %817 = vmatpush1.bf16.msra.mxu0 %v816_v31  ;;  %v936_v31 = vpack.c.bf16 %v206_v23, %v202_v21  ;;  %v223_v41 = vld [vmem:[#allocation5 + $0x4f8] sm:$0xff]  ;;  %v220_v47 = vld [vmem:[#allocation5 + $0x4e0] sm:$0xff]  ;;  %v218_v48 = vld [vmem:[#allocation5 + $0x4d0] sm:$0xff] }
  0x6d   :  { %917 = vmatpush1.bf16.msra.mxu1 %v916_v32  ;;  %819 = vmatprep.subr.bf16.mxu0 %v818_v33  ;;  %v838_v32 = vpack.c.bf16 %v213_v25, %v209_v24  ;;  %v208_v33 = vld [vmem:[#allocation5 + $0x480] sm:$0xff]  ;;  %v59_v42 = vld [vmem:[#allocation2 + $0x18] sm:$0xff]  ;;  %v222_v50 = vld [vmem:[#allocation5 + $0x4f0] sm:$0xff] }
  0x6e   :  { %919 = vmatprep.subr.bf16.mxu1 %v918_v37  ;;  %v214_v37 = vld [vmem:[#allocation5 + $0x4b0] sm:$0xff]  ;;  %v225_v51 = vld [vmem:[#allocation5 + $0x508] sm:$0xff]  ;;  %v227_v53 = vld [vmem:[#allocation5 + $0x518] sm:$0xff] }
  0x6f   :  { %v229_v52 = vld [vmem:[#allocation5 + $0x528] sm:$0xff]  ;;  %v231_v54 = vld [vmem:[#allocation5 + $0x538] sm:$0xff]  ;;  %v224_v58 = vld [vmem:[#allocation5 + $0x500] sm:$0xff] }
  0x70   :  { %821 = vmatpush1.bf16.msra.mxu0 %v820_v43  ;;  %v840_v43 = vpack.c.bf16 %v212_v34, %v208_v33  ;;  %v228_v59 = vld [vmem:[#allocation5 + $0x520] sm:$0xff]  ;;  %v226_v60 = vld [vmem:[#allocation5 + $0x510] sm:$0xff]  ;;  %v233_v63 = vld [vmem:[#allocation5 + $0x548] sm:$0xff] }
  0x71   :  { %921 = vmatpush1.bf16.msra.mxu1 %v920_v44  ;;  %823 = vmatprep.subr.bf16.mxu0 %v822_v45  ;;  %v940_v44 = vpack.c.bf16 %v214_v37, %v210_v35  ;;  %v842_v45 = vpack.c.bf16 %v221_v39, %v217_v38  ;;  %v230_v62 = vld [vmem:[#allocation5 + $0x530] sm:$0xff]  ;;  %v237_v0 = vld [vmem:[#allocation5 + $0x568] sm:$0xff]  ;;  %v235_v1 = vld [vmem:[#allocation5 + $0x558] sm:$0xff] }
  0x72   :  { %923 = vmatprep.subr.bf16.mxu1 %v922_v49  ;;  %v942_v49 = vpack.c.bf16 %v223_v41, %v219_v40  ;;  %v239_v2 = vld [vmem:[#allocation5 + $0x578] sm:$0xff]  ;;  %v232_v6 = vld [vmem:[#allocation5 + $0x540] sm:$0xff]  ;;  %v234_v8 = vld [vmem:[#allocation5 + $0x550] sm:$0xff] }
  0x73   :  { %v236_v7 = vld [vmem:[#allocation5 + $0x560] sm:$0xff]  ;;  %v238_v10 = vld [vmem:[#allocation5 + $0x570] sm:$0xff]  ;;  %v241_v11 = vld [vmem:[#allocation5 + $0x588] sm:$0xff] }
  0x74   :  { %825 = vmatpush1.bf16.msra.mxu0 %v824_v55  ;;  %v844_v55 = vpack.c.bf16 %v220_v47, %v216_v46  ;;  %v245_v12 = vld [vmem:[#allocation5 + $0x5a8] sm:$0xff]  ;;  %v243_v13 = vld [vmem:[#allocation5 + $0x598] sm:$0xff]  ;;  %v244_v19 = vld [vmem:[#allocation5 + $0x5a0] sm:$0xff] }
  0x75   :  { %925 = vmatpush1.bf16.msra.mxu1 %v924_v56  ;;  %827 = vmatprep.subr.bf16.mxu0 %v826_v57  ;;  %v944_v56 = vpack.c.bf16 %v222_v50, %v218_v48  ;;  %v846_v57 = vpack.c.bf16 %v229_v52, %v225_v51  ;;  %v247_v14 = vld [vmem:[#allocation5 + $0x5b8] sm:$0xff]  ;;  %v242_v20 = vld [vmem:[#allocation5 + $0x590] sm:$0xff]  ;;  %v249_v23 = vld [vmem:[#allocation5 + $0x5c8] sm:$0xff] }
  0x76   :  { %927 = vmatprep.subr.bf16.mxu1 %v926_v61  ;;  %v946_v61 = vpack.c.bf16 %v231_v54, %v227_v53  ;;  %v954_v21 = vpack.c.bf16 %v247_v14, %v243_v13  ;;  %v253_v24 = vld [vmem:[#allocation5 + $0x5e8] sm:$0xff]  ;;  %v251_v25 = vld [vmem:[#allocation5 + $0x5d8] sm:$0xff]  ;;  %v254_v34 = vld [vmem:[#allocation5 + $0x5f0] sm:$0xff] }
  0x77   :  { %v255_v26 = vld [vmem:[#allocation5 + $0x5f8] sm:$0xff]  ;;  %v257_v35 = vld [vmem:[#allocation5 + $0x608] sm:$0xff]  ;;  %v262_v46 = vld [vmem:[#allocation5 + $0x630] sm:$0xff] }
  0x78   :  { %829 = vmatpush1.bf16.msra.mxu0 %v828_v3  ;;  %v848_v3 = vpack.c.bf16 %v228_v59, %v224_v58  ;;  %v958_v33 = vpack.c.bf16 %v255_v26, %v251_v25  ;;  %v259_v37 = vld [vmem:[#allocation5 + $0x618] sm:$0xff]  ;;  %v607_v47 = vld [vmem:[#allocation7 + $0x80] sm:$0xff]  ;;  %v608_v48 = vld [vmem:[#allocation7 + $0x88] sm:$0xff] }
  0x79   :  { %929 = vmatpush1.bf16.msra.mxu1 %v928_v4  ;;  %831 = vmatprep.subr.bf16.mxu0 %v830_v5  ;;  %v948_v4 = vpack.c.bf16 %v230_v62, %v226_v60  ;;  %v850_v5 = vpack.c.bf16 %v237_v0, %v233_v63  ;;  %v263_v38 = vld [vmem:[#allocation5 + $0x638] sm:$0xff]  ;;  %v966_v51 = vpack.c.bf16 %v608_v48, %v607_v47  ;;  %v591_v52 = vld [vmem:[#allocation7] sm:$0xff]  ;;  %v592_v53 = vld [vmem:[#allocation7 + $0x8] sm:$0xff] }
  0x7a   :  { %931 = vmatprep.subr.bf16.mxu1 %v930_v9  ;;  %v950_v9 = vpack.c.bf16 %v239_v2, %v235_v1  ;;  %v609_v54 = vld [vmem:[#allocation7 + $0x90] sm:$0xff]  ;;  %v968_v58 = vpack.c.bf16 %v592_v53, %v591_v52  ;;  %v611_v62 = vld [vmem:[#allocation7 + $0xa0] sm:$0xff]  ;;  %v612_v63 = vld [vmem:[#allocation7 + $0xa8] sm:$0xff] }
  0x7b   :  { %336 = vmatmul.mubr.f32.vlgmr.msra.gmra.mrb[0].mxu0 %v56_v15  ;;  %v593_v60 = vld [vmem:[#allocation7 + $0x10] sm:$0xff]  ;;  %v974_v2 = vpack.c.bf16 %v612_v63, %v611_v62 }
  0x7c   :  { %833 = vmatpush1.bf16.msra.mxu0 %v832_v16  ;;  %490 = vmatmul.mubr.f32.vlgmr.msra.gmra.mrb[0].mxu1 %v56_v15  ;;  %v852_v15 = vpack.c.bf16 %v236_v7, %v232_v6  ;;  %v952_v16 = vpack.c.bf16 %v238_v10, %v234_v8  ;;  %v62_v0 = vld [vmem:[#allocation2 + $0x30] sm:$0xff]  ;;  %v614_v6 = vld [vmem:[#allocation7 + $0xb8] sm:$0xff] }
  0x7d   :  { %933 = vmatpush1.bf16.msra.mxu1 %v932_v17  ;;  %835 = vmatprep.subr.bf16.mxu0 %v834_v18  ;;  %v854_v17 = vpack.c.bf16 %v245_v12, %v241_v11  ;;  %v240_v18 = vld [vmem:[#allocation5 + $0x580] sm:$0xff]  ;;  %v598_v10 = vld [vmem:[#allocation7 + $0x38] sm:$0xff]  ;;  %v616_v12 = vld [vmem:[#allocation7 + $0xc8] sm:$0xff] }
  0x7e   :  { %935 = vmatprep.subr.bf16.mxu1 %v934_v22  ;;  %341 = vmatprep.mubr.f32.mxu0 %v61_v28  ;;  %v246_v22 = vld [vmem:[#allocation5 + $0x5b0] sm:$0xff]  ;;  %v856_v27 = vpack.c.bf16 %v244_v19, %v240_v18  ;;  %v615_v11 = vld [vmem:[#allocation7 + $0xc0] sm:$0xff]  ;;  %v618_v18 = vld [vmem:[#allocation7 + $0xd8] sm:$0xff] }
  0x7f   :  { %495 = vmatprep.mubr.f32.mxu1 %v61_v28  ;;  %342 = vmatmul.mubr.f32.gmra.mrb[2].mxu0 %v60_v30  ;;  %v956_v28 = vpack.c.bf16 %v246_v22, %v242_v20  ;;  %v982_v14 = vpack.c.bf16 %v616_v12, %v615_v11  ;;  %v602_v22 = vld [vmem:[#allocation7 + $0x58] sm:$0xff] }
  0x80   :  { %837 = vmatpush1.bf16.msra.mxu0 %v836_v29  ;;  %496 = vmatmul.mubr.f32.gmra.mrb[2].mxu1 %v60_v30  ;;  %v858_v29 = vpack.c.bf16 %v253_v24, %v249_v23  ;;  %v248_v30 = vld [vmem:[#allocation5 + $0x5c0] sm:$0xff]  ;;  %v620_v24 = vld [vmem:[#allocation7 + $0xe8] sm:$0xff] }
  0x81   :  { %937 = vmatpush1.bf16.msra.mxu1 %v936_v31  ;;  %839 = vmatprep.subr.bf16.mxu0 %v838_v32  ;;  %v252_v31 = vld [vmem:[#allocation5 + $0x5e0] sm:$0xff]  ;;  %v250_v32 = vld [vmem:[#allocation5 + $0x5d0] sm:$0xff] }
  0x82   :  { %939 = vmatprep.subr.bf16.mxu1 %v938_v36  ;;  %724 = vmatprep.mubr.msk.f32.mxu0 %vm264_vm0, %v59_v42  ;;  %v261_v36 = vld [vmem:[#allocation5 + $0x628] sm:$0xff]  ;;  %v860_v39 = vpack.c.bf16 %v252_v31, %v248_v30  ;;  %v960_v40 = vpack.c.bf16 %v254_v34, %v250_v32  ;;  %v619_v23 = vld [vmem:[#allocation7 + $0xe0] sm:$0xff]  ;;  %v621_v30 = vld [vmem:[#allocation7 + $0xf0] sm:$0xff] }
  0x83   :  { %726 = vmatprep.mubr.msk.f32.mxu1 %vm264_vm0, %v59_v42  ;;  %v862_v41 = vpack.c.bf16 %v261_v36, %v257_v35  ;;  %v256_v42 = vld [vmem:[#allocation5 + $0x600] sm:$0xff]  ;;  %v990_v26 = vpack.c.bf16 %v620_v24, %v619_v23  ;;  %v622_v31 = vld [vmem:[#allocation7 + $0xf8] sm:$0xff] }
  0x84   :  { %841 = vmatpush1.bf16.msra.mxu0 %v840_v43  ;;  %v260_v43 = vld [vmem:[#allocation5 + $0x620] sm:$0xff]  ;;  %v994_v32 = vpack.c.bf16 %v622_v31, %v621_v30  ;;  %v606_v34 = vld [vmem:[#allocation7 + $0x78] sm:$0xff] }
  0x85   :  { %941 = vmatpush1.bf16.msra.mxu1 %v940_v44  ;;  %843 = vmatprep.subr.bf16.mxu0 %v842_v45  ;;  %v258_v44 = vld [vmem:[#allocation5 + $0x610] sm:$0xff]  ;;  %v962_v45 = vpack.c.bf16 %v263_v38, %v259_v37 }
  0x86   :  { %943 = vmatprep.subr.bf16.mxu1 %v942_v49  ;;  %v864_v49 = vpack.c.bf16 %v260_v43, %v256_v42  ;;  %v964_v50 = vpack.c.bf16 %v262_v46, %v258_v44 }
  0x88   :  { %845 = vmatpush1.bf16.msra.mxu0 %v844_v55  ;;  %v610_v55 = vld [vmem:[#allocation7 + $0x98] sm:$0xff] }
  0x89   :  { %945 = vmatpush1.bf16.msra.mxu1 %v944_v56  ;;  %847 = vmatprep.subr.bf16.mxu0 %v846_v57  ;;  %v58_v56 = vld [vmem:[#allocation2 + $0x10] sm:$0xff]  ;;  %v63_v57 = vld [vmem:[#allocation2 + $0x38] sm:$0xff]  ;;  %v970_v59 = vpack.c.bf16 %v610_v55, %v609_v54 }
  0x8a   :  { %947 = vmatprep.subr.bf16.mxu1 %v946_v61  ;;  %v594_v61 = vld [vmem:[#allocation7 + $0x18] sm:$0xff] }
  0x8b   :  { %v972_v1 = vpack.c.bf16 %v594_v61, %v593_v60 }
  0x8c   :  { %849 = vmatpush1.bf16.msra.mxu0 %v848_v3  ;;  %v595_v3 = vld [vmem:[#allocation7 + $0x20] sm:$0xff] }
  0x8d   :  { %949 = vmatpush1.bf16.msra.mxu1 %v948_v4  ;;  %851 = vmatprep.subr.bf16.mxu0 %v850_v5  ;;  %v596_v4 = vld [vmem:[#allocation7 + $0x28] sm:$0xff]  ;;  %v613_v5 = vld [vmem:[#allocation7 + $0xb0] sm:$0xff] }
  0x8e   :  { %951 = vmatprep.subr.bf16.mxu1 %v950_v9  ;;  %v976_v7 = vpack.c.bf16 %v596_v4, %v595_v3  ;;  %v978_v8 = vpack.c.bf16 %v614_v6, %v613_v5  ;;  %v597_v9 = vld [vmem:[#allocation7 + $0x30] sm:$0xff] }
  0x8f   :  { %v980_v13 = vpack.c.bf16 %v598_v10, %v597_v9 }
  0x90   :  { %853 = vmatpush1.bf16.msra.mxu0 %v852_v15  ;;  %v599_v15 = vld [vmem:[#allocation7 + $0x40] sm:$0xff] }
  0x91   :  { %953 = vmatpush1.bf16.msra.mxu1 %v952_v16  ;;  %855 = vmatprep.subr.bf16.mxu0 %v854_v17  ;;  %v600_v16 = vld [vmem:[#allocation7 + $0x48] sm:$0xff]  ;;  %v617_v17 = vld [vmem:[#allocation7 + $0xd0] sm:$0xff] }
  0x92   :  { %955 = vmatprep.subr.bf16.mxu1 %v954_v21  ;;  %v984_v19 = vpack.c.bf16 %v600_v16, %v599_v15  ;;  %v986_v20 = vpack.c.bf16 %v618_v18, %v617_v17  ;;  %v601_v21 = vld [vmem:[#allocation7 + $0x50] sm:$0xff] }
  0x93   :  { %v988_v25 = vpack.c.bf16 %v602_v22, %v601_v21 }
  0x94   :  { %857 = vmatpush1.bf16.msra.mxu0 %v856_v27  ;;  %v603_v27 = vld [vmem:[#allocation7 + $0x60] sm:$0xff] }
  0x95   :  { %957 = vmatpush1.bf16.msra.mxu1 %v956_v28  ;;  %859 = vmatprep.subr.bf16.mxu0 %v858_v29  ;;  %v604_v28 = vld [vmem:[#allocation7 + $0x68] sm:$0xff] }
  0x96   :  { %959 = vmatprep.subr.bf16.mxu1 %v958_v33  ;;  %v992_v29 = vpack.c.bf16 %v604_v28, %v603_v27  ;;  %v605_v33 = vld [vmem:[#allocation7 + $0x70] sm:$0xff] }
  0x97   :  { %v996_v35 = vpack.c.bf16 %v606_v34, %v605_v33 }
  0x98   :  { %861 = vmatpush1.bf16.msra.mxu0 %v860_v39 }
  0x99   :  { %961 = vmatpush1.bf16.msra.mxu1 %v960_v40  ;;  %863 = vmatprep.subr.bf16.mxu0 %v862_v41 }
  0x9a   :  { %963 = vmatprep.subr.bf16.mxu1 %v962_v45 }
  0x9c   :  { %865 = vmatpush1.bf16.msra.mxu0 %v864_v49 }
  0x9d   :  { %965 = vmatpush1.bf16.msra.mxu1 %v964_v50  ;;  %967 = vmatprep.subr.bf16.mxu0 %v966_v51 }
  0x9e   :  { %998 = vmatprep.subr.bf16.mxu1 %v966_v51 }
  0x9f   :  { %413 = vmatmul.mubr.f32.vlgmr.msra.gmra.mrb[0].mxu0 %v58_v56 }
  0xa0   :  { %567 = vmatmul.mubr.f32.vlgmr.msra.gmra.mrb[0].mxu1 %v58_v56  ;;  %725 = vmatprep.mubr.msk.f32.mxu0 %vm264_vm0, %v63_v57 }
  0xa1   :  { %727 = vmatprep.mubr.msk.f32.mxu1 %vm264_vm0, %v63_v57  ;;  %969 = vmatpush3.bf16.msra.mxu0 %v968_v58 }
  0xa2   :  { %971 = vmatprep.subr.bf16.mxu0 %v970_v59  ;;  %1006 = vmatpush3.bf16.msra.mxu1 %v968_v58 }
  0xa3   :  { %419 = vmatmul.mubr.f32.gmra.mrb[2].mxu0 %v62_v0  ;;  %999 = vmatprep.subr.bf16.mxu1 %v970_v59 }
  0xa4   :  { %573 = vmatmul.mubr.f32.gmra.mrb[2].mxu1 %v62_v0 }
  0xa5   :  { %973 = vmatpush3.bf16.msra.mxu0 %v972_v1 }
  0xa6   :  { %975 = vmatprep.subr.bf16.mxu0 %v974_v2  ;;  %1007 = vmatpush3.bf16.msra.mxu1 %v972_v1 }
  0xa7   :  { %1000 = vmatprep.subr.bf16.mxu1 %v974_v2 }
  0xa9   :  { %977 = vmatpush3.bf16.msra.mxu0 %v976_v7 }
  0xaa   :  { %979 = vmatprep.subr.bf16.mxu0 %v978_v8  ;;  %1008 = vmatpush3.bf16.msra.mxu1 %v976_v7 }
  0xab   :  { %1001 = vmatprep.subr.bf16.mxu1 %v978_v8 }
  0xad   :  { %981 = vmatpush3.bf16.msra.mxu0 %v980_v13 }
  0xae   :  { %983 = vmatprep.subr.bf16.mxu0 %v982_v14  ;;  %1009 = vmatpush3.bf16.msra.mxu1 %v980_v13 }
  0xaf   :  { %1002 = vmatprep.subr.bf16.mxu1 %v982_v14 }
  0xb1   :  { %985 = vmatpush3.bf16.msra.mxu0 %v984_v19 }
  0xb2   :  { %987 = vmatprep.subr.bf16.mxu0 %v986_v20  ;;  %1010 = vmatpush3.bf16.msra.mxu1 %v984_v19 }
  0xb3   :  { %1003 = vmatprep.subr.bf16.mxu1 %v986_v20 }
  0xb5   :  { %989 = vmatpush3.bf16.msra.mxu0 %v988_v25 }
  0xb6   :  { %991 = vmatprep.subr.bf16.mxu0 %v990_v26  ;;  %1011 = vmatpush3.bf16.msra.mxu1 %v988_v25 }
  0xb7   :  { %1004 = vmatprep.subr.bf16.mxu1 %v990_v26 }
  0xb9   :  { %993 = vmatpush3.bf16.msra.mxu0 %v992_v29 }
  0xba   :  { %1012 = vmatpush3.bf16.msra.mxu1 %v992_v29  ;;  %995 = vmatprep.subr.bf16.mxu0 %v994_v32 }
  0xbb   :  { %1005 = vmatprep.subr.bf16.mxu1 %v994_v32 }
  0xbd   :  { %997 = vmatpush3.bf16.msra.mxu0 %v996_v35 }
  0xbe   :  { %1013 = vmatpush3.bf16.msra.mxu1 %v996_v35 }
 0x172   :  { %v414_v36 = vpop.f32.mrb[0].mxu0 }
 0x173   :  { %v579_v37 = vmul.f32 %v414_v36, %v414_v36  ;;  %v568_v38 = vpop.f32.mrb[0].mxu1  ;;  %v416_v39 = vpop.f32.mrb[1].mxu0 }
 0x174   :  { %v581_v40 = vmul.f32 %v568_v38, %v568_v38  ;;  %v580_v41 = vmul.f32 %v416_v39, %v416_v39  ;;  %v570_v42 = vpop.f32.mrb[1].mxu1 }
 0x175   :  { %v582_v43 = vmul.f32 %v570_v42, %v570_v42 }
 0x176   :  { %v587_v44 = vadd.f32 %v581_v40, %v579_v37  ;;  %v420_v45 = vpop.f32.mrb[2].mxu0 }
 0x177   :  { %v588_v46 = vadd.f32 %v582_v43, %v580_v41  ;;  %v583_v47 = vmul.f32 %v420_v45, %v420_v45  ;;  %v574_v48 = vpop.f32.mrb[2].mxu1  ;;  %v422_v49 = vpop.f32.mrb[3].mxu0 }
 0x178   :  { %v585_v50 = vmul.f32 %v574_v48, %v574_v48  ;;  %v584_v51 = vmul.f32 %v422_v49, %v422_v49  ;;  %v576_v52 = vpop.f32.mrb[3].mxu1 }
 0x179   :  { %v586_v53 = vmul.f32 %v576_v52, %v576_v52  ;;  %687 = vmatprep.mubr.f32.mxu0 %v588_v46 }
 0x17a   :  { %v589_v54 = vadd.f32 %v585_v50, %v583_v47  ;;  %688 = vmatmul.mubr.f32.vlgmr.msra.gmra.mrb[4].mxu0 %v587_v44 }
 0x17b   :  { %v590_v55 = vadd.f32 %v586_v53, %v584_v51 }
 0x17d   :  { %692 = vmatprep.mubr.f32.mxu1 %v590_v55 }
 0x17e   :  { %693 = vmatmul.mubr.f32.vlgmr.msra.gmra.mrb[4].mxu1 %v589_v54 }
 0x24d   :  { %v760_v56 = vpop.f32.mrb[4].mxu0 }
 0x24e   :  { %v761_v57 = vpop.f32.mrb[5].mxu0 }
 0x24f   :  { %v762_v58 = vadd.f32 %v761_v57, %v760_v56 }
 0x251   :  { %v698_v59 = vmax.f32 %v762_v58, 1.1920929e-07  ;;  %v763_v60 = vpop.f32.mrb[4].mxu1 }
 0x252   :  { %v764_v61 = vpop.f32.mrb[5].mxu1 }
 0x253   :  { %1030 = vlog2.f32 %v698_v59  ;;  %v765_v62 = vadd.f32 %v764_v61, %v763_v60 }
 0x255   :  { %v699_v63 = vmax.f32 %v765_v62, 1.1920929e-07 }
 0x257   :  { %1032 = vlog2.f32 %v699_v63 }
 0x25d   :  { %v1031_v0 = vpop.eup %1030 }
 0x25e   :  { %v701_v1 = vmul.f32 0.6931472, %v1031_v0 }
 0x260   :  { %704 = vst [vmem:[#allocation8] sm:$0xff] %v701_v1 }
 0x261   :  { %v1033_v2 = vpop.eup %1032 }
 0x262   :  { %v703_v3 = vmul.f32 0.6931472, %v1033_v2 }
 0x264   :  { %705 = vst [vmem:[#allocation8 + $0x8] sm:$0xff] %v703_v3 }
 0x265   :  { %1111 = shalt.err (!%p1108_p0)
}
 0x266   :  { %s1112_s27 = scalar_lea.hbm %s1224_s3, 256 }
 0x267   :  { %p1113_p1 = scmp.ne.s32.totalorder %s1224_s3, %s1112_s27  ;;  %p1116_p2 = scmp.lt.u32.totalorder %s1112_s27, %s1224_s3 }
 0x269   :  { %p1118_p3 = pnand %p1116_p2, %p1113_p1 }
 0x26b   :  { %1121 = shalt.err (!%p1118_p3)
}
 0x26c   :  { %717 = dma.vmem_to_hbm [thread:$0]  %s712_s23, 256, %s1224_s3, [#allocation4], %s1133_s0, %s1133_s0, %s1134_s15  }
 0x26d   :  { %1126 = dma.done.wait [#allocation4], 256  }
 0x26e   :  { %1127 = vsyncadd [#allocation4], 4294967040 }
 0x26f   :  { %721 = vsyncpa [#allocation3], 1 }
 0x270   :  { %722 = vsyncpa [#allocation6], 1 }
 0x271   :  { %723 = vsyncpa [#allocation4], 1 }

</bundles_post_ra>
